<compile_context>
chip_gen: v7x
topology: tpu7x:2x2x1
jax: 0.10.0
libtpu: 0.0.40
codegen_flags: <defaults>
</compile_context>

<pallas_src>
import jax
import jax.numpy as jnp
from jax.experimental import pallas as pl
from jax.experimental.pallas import tpu as pltpu

_EPS = 1e-12  # torch.nn.functional.normalize default eps (clamp_min on the norm)


def _round_up(v, m):
    return ((v + m - 1) // m) * m


# ----------------------------- Pallas kernel ------------------------------- #

def _sim_tile_kernel(z_ref, x_ref, inv_z_ref, inv_x_ref, sim_ref):
    """One (tm, tn) tile of  normalize(z, dim=1) @ normalize(x, dim=1).T.

    z_ref:     (tm, D)  raw text-embedding rows      (input / mxu dtype)
    x_ref:     (tn, D)  raw event-embedding rows     (input / mxu dtype)
    inv_z_ref: (tm, 1)  1 / max(||z_row||, eps), f32
    inv_x_ref: (1, tn)  1 / max(||x_row||, eps), f32
    sim_ref:   (tm, tn) f32 output tile
    """
    acc = jax.lax.dot_general(
        z_ref[...], x_ref[...],
        dimension_numbers=(((1,), (1,)), ((), ())),  # contract on D -> (tm, tn)
        preferred_element_type=jnp.float32,
    )
    sim_ref[...] = acc * inv_z_ref[...] * inv_x_ref[...]


# ------------------------------ Wrapper ------------------------------------ #

def compute_sim_pallas(text_embed, event_embed, *, tm=256, tn=512, mxu_dtype=None):
    """L2-normalized cosine-similarity matrix, shape (Z, X), float32.

    mxu_dtype: optional narrower operand dtype for the MXU (e.g. jnp.bfloat16
    on v6e/v7x).  Accumulation stays f32 and the norms (computed in f32) scale
    the f32 result, never the narrowed operands.
    """
    Z, D = text_embed.shape
    X, D2 = event_embed.shape
    assert D == D2

    # --- tiny prepass (plain JAX): inverse L2 norms with torch.F.normalize
    #     semantics (clamp the norm at eps).  Hoisted out of the tiled kernel
    #     so each row is normalized exactly once regardless of the grid.
    z32 = text_embed.astype(jnp.float32)
    x32 = event_embed.astype(jnp.float32)
    inv_z = jax.lax.rsqrt(
        jnp.maximum(jnp.sum(z32 * z32, axis=1, keepdims=True), _EPS * _EPS))      # (Z, 1)
    inv_x = jax.lax.rsqrt(
        jnp.maximum(jnp.sum(x32 * x32, axis=1, keepdims=True), _EPS * _EPS)).T    # (1, X)

    # --- MXU operand dtype (keep input dtype unless explicitly narrowed) ---
    z_op = text_embed if mxu_dtype is None else text_embed.astype(mxu_dtype)
    x_op = event_embed if mxu_dtype is None else event_embed.astype(mxu_dtype)
    in_bytes = jnp.dtype(z_op.dtype).itemsize

    # --- tile sizes: sublane-aligned tm (x8), lane-dense tn (x128); shrink
    #     until double-buffered input slabs + output tiles fit comfortably
    #     inside the 32 MiB scoped-VMEM default (binding on v7x).
    def _footprint(tm_, tn_):
        return 2 * (tm_ * D + tn_ * D) * in_bytes + 2 * tm_ * tn_ * 4

    budget = 24 * 1024 * 1024
    while _footprint(tm, tn) > budget and tm > 8:
        tm //= 2
    while _footprint(tm, tn) > budget and tn > 128:
        tn //= 2
    tm = min(tm, _round_up(Z, 8))
    tn = min(tn, _round_up(X, 128))
    Zp, Xp = _round_up(Z, tm), _round_up(X, tn)

    # --- pad to tile multiples (padding is zero -> zero sims, sliced off) ---
    z_p = jnp.pad(z_op, ((0, Zp - Z), (0, 0)))
    x_p = jnp.pad(x_op, ((0, Xp - X), (0, 0)))
    inv_z_p = jnp.pad(inv_z, ((0, Zp - Z), (0, 0)))
    inv_x_p = jnp.pad(inv_x, ((0, 0), (0, Xp - X)))

    grid = (Zp // tm, Xp // tn)
    sims_p = pl.pallas_call(
        _sim_tile_kernel,
        out_shape=jax.ShapeDtypeStruct((Zp, Xp), jnp.float32),
        grid=grid,
        in_specs=[
            pl.BlockSpec((tm, D), lambda i, j: (i, 0)),   # z rows
            pl.BlockSpec((tn, D), lambda i, j: (j, 0)),   # x rows
            pl.BlockSpec((tm, 1), lambda i, j: (i, 0)),   # 1/||z||
            pl.BlockSpec((1, tn), lambda i, j: (0, j)),   # 1/||x||
        ],
        out_specs=pl.BlockSpec((tm, tn), lambda i, j: (i, j)),
        compiler_params=pltpu.CompilerParams(
            dimension_semantics=("parallel", "parallel")),
    )(z_p, x_p, inv_z_p, inv_x_p)
    return sims_p[:Z, :X]


class DTWMatcherPallas:
    """JAX/Pallas port of DTWMatcher's similarity / cost-matrix construction.

    No trainable parameters; the "weights" are the text/event embeddings.
    """

    def __init__(self, keep_percentile, top_band_size=0, given_droplines=None,
                 drop_z=True, one_to_many=False, many_to_one=False,
                 contiguous=False, mxu_dtype=None):
        self.keep_percentile = keep_percentile
        self.top_band_size = top_band_size
        self.given_droplines = given_droplines
        self.drop_z = drop_z
        self.one_to_many = one_to_many
        self.many_to_one = many_to_one
        self.contiguous = contiguous
        self.mxu_dtype = mxu_dtype

    def forward(self, text_embed, event_embed, outputs=None, targets=None):
        # (outputs/targets are unused by the cost construction, as in the original.)
        # --- hot path: cosine similarity (tiled Pallas MXU kernel) ---
        sims = compute_sim_pallas(text_embed, event_embed, mxu_dtype=self.mxu_dtype)

        # --- dropline selection (small top-k glue, plain JAX) ---
        top_sim = sims
        if self.given_droplines is None:
            if 0 < self.top_band_size < sims.shape[1]:
                top_sim = jax.lax.top_k(sims, self.top_band_size)[0]
            if self.keep_percentile > 1:
                dropline = jnp.min(top_sim) - 5.0
            else:
                k = max(1, int(top_sim.size * self.keep_percentile))
                dropline = jax.lax.top_k(top_sim.reshape(-1), k)[0][-1]
        else:
            dropline = jnp.asarray(self.given_droplines[0], jnp.float32)

        # --- cost matrix + drop costs: plain JAX so XLA fuses with consumers ---
        zx_costs = dropline - sims
        z_drop_costs = jnp.zeros((sims.shape[0],), jnp.float32)
        x_drop_costs = jnp.zeros((sims.shape[1],), jnp.float32)

        # TODO(synk): the NW / drop-DTW alignment DP (batch_NW_machine,
        # exact_batch_double_drop_dtw_machine, exact_batch_drop_dtw_machine)
        # is not part of the provided reference source, so align_paths and the
        # resulting (query_indices, text_indices) are not computed here.
        return sims, zx_costs, z_drop_costs, x_drop_costs, dropline


# -------------------------------- main -------------------------------------- #

if __name__ == "__main__":
    key = jax.random.PRNGKey(0)
    kz, kx, kz2, kx2 = jax.random.split(key, 4)

    def _ref_sims(z, x):
        def n(a):
            nm = jnp.sqrt(jnp.sum(a * a, axis=1, keepdims=True))
            return a / jnp.maximum(nm, _EPS)
        return n(z) @ n(x).T

    # --- module-consistent small shapes ---
    Z, X, D = 8, 16, 32  # num_text_tokens, num_event_queries, hidden
    text_embed = jax.random.normal(kz, (Z, D), dtype=jnp.float32)
    event_embed = jax.random.normal(kx, (X, D), dtype=jnp.float32)

    matcher = DTWMatcherPallas(keep_percentile=0.5)
    sims, zx_costs, z_drop, x_drop, dropline = matcher.forward(text_embed, event_embed)
    jax.block_until_ready((sims, zx_costs, z_drop, x_drop, dropline))

    sims_ref = _ref_sims(text_embed, event_embed)
    k = max(1, int(sims_ref.size * 0.5))
    dropline_ref = jax.lax.top_k(sims_ref.reshape(-1), k)[0][-1]
    costs_ref = dropline_ref - sims_ref
    assert jnp.allclose(sims, sims_ref, atol=1e-5), "sim mismatch"
    assert jnp.allclose(zx_costs, costs_ref, atol=1e-5), "cost mismatch"

    # --- exercise the tiled / padded path (multi-block grid, unaligned Z/X) ---
    Z2, X2, D2 = 300, 200, 64
    t2 = jax.random.normal(kz2, (Z2, D2), dtype=jnp.float32)
    e2 = jax.random.normal(kx2, (X2, D2), dtype=jnp.float32)
    sims2 = compute_sim_pallas(t2, e2, tm=128, tn=128)
    jax.block_until_ready(sims2)
    assert sims2.shape == (Z2, X2)
    assert jnp.allclose(sims2, _ref_sims(t2, e2), atol=1e-5), "tiled sim mismatch"

    # --- bf16-operand MXU fast path (v6e/v7x); norms applied in f32 ---
    sims_bf16 = compute_sim_pallas(text_embed, event_embed, mxu_dtype=jnp.bfloat16)
    jax.block_until_ready(sims_bf16)
    assert jnp.allclose(sims_bf16, sims_ref, atol=5e-2), "bf16 sim mismatch"

    print("KERNEL_OK")
</pallas_src>

<mosaic_0001>
module attributes {stable_mosaic.version = 11 : i64} {
  func.func @_sim_tile_kernel(%arg0: i32, %arg1: i32, %arg2: memref<8x32xf32, #tpu.memory_space<vmem>>, %arg3: memref<128x32xf32, #tpu.memory_space<vmem>>, %arg4: memref<8x1xf32, #tpu.memory_space<vmem>>, %arg5: memref<1x128xf32, #tpu.memory_space<vmem>>, %arg6: memref<8x128xf32, #tpu.memory_space<vmem>>) attributes {dimension_semantics = [#tpu.dimension_semantics<parallel>, #tpu.dimension_semantics<parallel>], iteration_bounds = array<i64: 1, 1>, scalar_prefetch = 0 : i64, scratch_operands = 0 : i64, tpu.core_type = #tpu.core_type<tc>, window_params = [{transform_indices = @transform_0, window_bounds = array<i64: 8, 32>}, {transform_indices = @transform_1, window_bounds = array<i64: 128, 32>}, {transform_indices = @transform_2, window_bounds = array<i64: 8, 1>}, {transform_indices = @transform_3, window_bounds = array<i64: 1, 128>}, {transform_indices = @transform_4, window_bounds = array<i64: 8, 128>}]} {
    %c0 = arith.constant 0 : index
    %c0_0 = arith.constant 0 : index
    %0 = vector.load %arg2[%c0, %c0_0] : memref<8x32xf32, #tpu.memory_space<vmem>>, vector<8x32xf32>
    %c0_1 = arith.constant 0 : index
    %c0_2 = arith.constant 0 : index
    %1 = vector.load %arg3[%c0_1, %c0_2] : memref<128x32xf32, #tpu.memory_space<vmem>>, vector<128x32xf32>
    %cst = arith.constant dense<0.000000e+00> : vector<8x128xf32>
    %2 = tpu.matmul %0, %1, %cst {dimension_numbers = #tpu.dot_dimension_numbers<[1], [1], [0], [0], [0, 0, 1, 0], [], []>} : vector<8x32xf32>, vector<128x32xf32>, vector<8x128xf32> -> vector<8x128xf32>
    %c0_3 = arith.constant 0 : index
    %c0_4 = arith.constant 0 : index
    %3 = vector.load %arg4[%c0_3, %c0_4] : memref<8x1xf32, #tpu.memory_space<vmem>>, vector<8x1xf32>
    %4 = vector.broadcast %3 : vector<8x1xf32> to vector<8x128xf32>
    %5 = arith.mulf %2, %4 : vector<8x128xf32>
    %c0_5 = arith.constant 0 : index
    %c0_6 = arith.constant 0 : index
    %6 = vector.load %arg5[%c0_5, %c0_6] : memref<1x128xf32, #tpu.memory_space<vmem>>, vector<1x128xf32>
    %7 = vector.broadcast %6 : vector<1x128xf32> to vector<8x128xf32>
    %8 = arith.mulf %5, %7 : vector<8x128xf32>
    %c0_7 = arith.constant 0 : index
    %c0_8 = arith.constant 0 : index
    %9 = vector.load %arg6[%c0_7, %c0_8] : memref<8x128xf32, #tpu.memory_space<vmem>>, vector<8x128xf32>
    tpu.vector_store %arg6[%c0_7, %c0_8], %8 {strides = array<i32>} : memref<8x128xf32, #tpu.memory_space<vmem>>, vector<8x128xf32>,
    return
  }
  func.func @transform_0(%arg0: i32, %arg1: i32) -> (i32, i32) {
    %c0_i32 = arith.constant 0 : i32
    %c0_i32_0 = arith.constant 0 : i32
    return %arg0, %c0_i32 : i32, i32
  }
  func.func @transform_1(%arg0: i32, %arg1: i32) -> (i32, i32) {
    %c0_i32 = arith.constant 0 : i32
    %c0_i32_0 = arith.constant 0 : i32
    return %arg1, %c0_i32 : i32, i32
  }
  func.func @transform_2(%arg0: i32, %arg1: i32) -> (i32, i32) {
    %c0_i32 = arith.constant 0 : i32
    %c0_i32_0 = arith.constant 0 : i32
    return %arg0, %c0_i32 : i32, i32
  }
  func.func @transform_3(%arg0: i32, %arg1: i32) -> (i32, i32) {
    %c0_i32 = arith.constant 0 : i32
    %c0_i32_0 = arith.constant 0 : i32
    return %c0_i32, %arg1 : i32, i32
  }
  func.func @transform_4(%arg0: i32, %arg1: i32) -> (i32, i32) {
    %c0_i32 = arith.constant 0 : i32
    return %arg0, %arg1 : i32, i32
  }
}

</mosaic_0001>

<bundles_post_ra>
// kernel: tpu_custom_call.1
= control target key start
LH: loop header
LB: loop body
LE: loop exit
PB: predicated region body
PF: predicated region fallthrough
CT: control target
= control target key end

     0   :  { %vm35_vm0 = vcmask 261120   ;;  %v319_v2 = vmov 0.0|0.0   ;;  %vm320_vm2 = vmmov 0   ;;  %v321_v5 = vmov 0.0   ;;  %s441_s0 = inlined_call_operand.vmem [shape: f32[8,32], index: 0, kind: input, shape index: {}]   ;;  %s442_s1 = inlined_call_operand.vmem [shape: f32[128,32], index: 1, kind: input, shape index: {}]   ;;  %s443_s2 = inlined_call_operand.vmem [shape: f32[8,1], index: 2, kind: input, shape index: {}]   ;;  %s444_s3 = inlined_call_operand.vmem [shape: f32[1,128], index: 3, kind: input, shape index: {}]   ;;  %s445_s4 = inlined_call_operand.hbm [shape: f32[8,128], index: 4, kind: output, shape index: {}]  }
   0x1   :  { %v19_v0 = vld [vmem:[%s442_s1] sm:$0xff]  ;;  %v20_v1 = vld [vmem:[%s442_s1 + $0x8] sm:$0xff]  ;;  %257 = vmatprep.subr.bf16.mxu0 %v319_v2  ;;  %vm357_vm1 = vmpackc.low %vm35_vm0, %vm35_vm0  ;;  %254 = vmatprep.mubr.msk.f32.mxu0 %vm320_vm2, %v321_v5  ;;  %v322_v6 = vmov 0  }
   0x2   :  { %v258_v3 = vpack.c.bf16 %v20_v1, %v19_v0  ;;  %294 = vset.pattern.permute.xlu0 %v322_v6  ;;  %v21_v7 = vld [vmem:[%s442_s1 + $0x10] sm:$0xff]  ;;  %v22_v8 = vld [vmem:[%s442_s1 + $0x18] sm:$0xff]  ;;  %v157_v9 = vld [vmem:[%s443_s2] sm:$0xff] }
   0x4   :  { %260 = vmatpush3.bf16.xpose.msk.msra.mxu0 %vm357_vm1, %v258_v3 }
   0x5   :  { %261 = vmatprep.subr.bf16.mxu0 %v319_v2 }
   0x6   :  { %9 = vsyncpa [#allocation3], 0  ;;  %v262_v10 = vpack.c.bf16 %v22_v8, %v21_v7  ;;  %160 = vperm.xlu0 %294, %v157_v9   ;;  %v23_v11 = vld [vmem:[%s442_s1 + $0x20] sm:$0xff]  ;;  %v24_v12 = vld [vmem:[%s442_s1 + $0x28] sm:$0xff]  ;;  %s323_s26 = smov [#allocation2]  }
   0x7   :  { %v266_v13 = vpack.c.bf16 %v24_v12, %v23_v11  ;;  %v25_v14 = vld [vmem:[%s442_s1 + $0x30] sm:$0xff]  ;;  %v26_v15 = vld [vmem:[%s442_s1 + $0x38] sm:$0xff]  ;;  %v27_v17 = vld [vmem:[%s442_s1 + $0x40] sm:$0xff]  ;;  %s179_s27 = sshll.u32 %s323_s26, 4  ;;  %s180_s27 = int_to_ptr.vmem [resolvable:$true] %s179_s27 }
   0x8   :  { %v270_v16 = vpack.c.bf16 %v26_v15, %v25_v14  ;;  %v28_v18 = vld [vmem:[%s442_s1 + $0x48] sm:$0xff]  ;;  %v29_v20 = vld [vmem:[%s442_s1 + $0x50] sm:$0xff]  ;;  %v30_v21 = vld [vmem:[%s442_s1 + $0x58] sm:$0xff]  ;;  %p300_p1 = scmp.lt.s32.totalorder %s180_s27, %s180_s27 }
   0x9   :  { %v274_v19 = vpack.c.bf16 %v28_v18, %v27_v17  ;;  %v278_v22 = vpack.c.bf16 %v30_v21, %v29_v20  ;;  %v31_v23 = vld [vmem:[%s442_s1 + $0x60] sm:$0xff]  ;;  %v32_v24 = vld [vmem:[%s442_s1 + $0x68] sm:$0xff]  ;;  %v33_v26 = vld [vmem:[%s442_s1 + $0x70] sm:$0xff] }
   0xa   :  { %v282_v25 = vpack.c.bf16 %v32_v24, %v31_v23  ;;  %v34_v27 = vld [vmem:[%s442_s1 + $0x78] sm:$0xff]  ;;  %v18_v29 = vld [vmem:[%s441_s0] sm:$0xff]  ;;  %s295_s1 = scalar_lea.vmem %s180_s27, 128 }
   0xb   :  { %v286_v28 = vpack.c.bf16 %v34_v27, %v33_v26  ;;  %v204_v32 = vld [vmem:[%s444_s3] ss:$0 sm:$0xff]  ;;  %p296_p0 = scmp.ne.s32.totalorder %s180_s27, %s295_s1  ;;  %p301_p2 = scmp.lt.s32.totalorder %s295_s1, %s295_s1 }
   0xc   :  { %264 = vmatpush3.bf16.xpose.msk.msra.mxu0 %vm357_vm1, %v262_v10 }
   0xd   :  { %265 = vmatprep.subr.bf16.mxu0 %v319_v2  ;;  %p302_p3 = por %p301_p2, %p300_p1 }
   0xf   :  { %p303_p4 = pnand %p302_p3, %p296_p0 }
  0x14   :  { %268 = vmatpush3.bf16.xpose.msk.msra.mxu0 %vm357_vm1, %v266_v13 }
  0x15   :  { %269 = vmatprep.subr.bf16.mxu0 %v319_v2 }
  0x1c   :  { %272 = vmatpush3.bf16.xpose.msk.msra.mxu0 %vm357_vm1, %v270_v16 }
  0x1d   :  { %273 = vmatprep.subr.bf16.mxu0 %v319_v2 }
  0x24   :  { %276 = vmatpush3.bf16.xpose.msk.msra.mxu0 %vm357_vm1, %v274_v19 }
  0x25   :  { %277 = vmatprep.subr.bf16.mxu0 %v319_v2 }
  0x2c   :  { %280 = vmatpush3.bf16.xpose.msk.msra.mxu0 %vm357_vm1, %v278_v22 }
  0x2d   :  { %281 = vmatprep.subr.bf16.mxu0 %v319_v2 }
  0x34   :  { %284 = vmatpush3.bf16.xpose.msk.msra.mxu0 %vm357_vm1, %v282_v25 }
  0x35   :  { %285 = vmatprep.subr.bf16.mxu0 %v319_v2 }
  0x3c   :  { %288 = vmatpush3.bf16.xpose.msk.msra.mxu0 %vm357_vm1, %v286_v28 }
  0x43   :  { %255 = vmatmul.mubr.msk.f32.vlgmr.msra.gmra.mrb[0].mxu0 %vm35_vm0, %v18_v29 }
  0x85   :  { %v161_v30 = vpop.permute.xlu0 %160 }
 0x116   :  { %v153_v31 = vpop.f32.mrb[0].mxu0 }
 0x117   :  { %v163_v33 = vmul.f32 %v161_v30, %v153_v31  ;;  %v256_v34 = vpop.f32.mrb[1].mxu0 }
 0x119   :  { %v171_v35 = vmul.f32 %v204_v32, %v163_v33 }
 0x11b   :  { %172 = vst [vmem:[#allocation2] sm:$0xff] %v171_v35 }
 0x11c   :  { %306 = shalt.err (!%p303_p4)
}
 0x11d   :  { %s307_s2 = scalar_lea.hbm %s445_s4, 128 }
 0x11e   :  { %p308_p5 = scmp.ne.s32.totalorder %s445_s4, %s307_s2  ;;  %p311_p6 = scmp.lt.u32.totalorder %s307_s2, %s445_s4 }
 0x120   :  { %p313_p7 = pnand %p311_p6, %p308_p5 }
 0x122   :  { %316 = shalt.err (!%p313_p7)
}
 0x123   :  { %182 = dma.vmem_to_hbm [thread:$0]  %s180_s27, 128, %s445_s4, [#allocation3]  }
 0x124   :  { %317 = dma.done.wait [#allocation3], 128  }
 0x125   :  { %318 = vsyncadd [#allocation3], 4294967168 }
 0x126   :  { %186 = vsyncpa [#allocation3], 1 }

</bundles_post_ra>
